<compile_context>
chip_gen: v7x
topology: tpu7x:2x2x1
jax: 0.10.0
libtpu: 0.0.40
codegen_flags: <defaults>
</compile_context>

<pallas_src>
import functools

import jax
import jax.numpy as jnp
import numpy as np
from jax.experimental import pallas as pl
from jax.experimental.pallas import tpu as pltpu


def _round_up(x, m):
    return ((x + m - 1) // m) * m


def _choose_tile(B, tile_b):
    """Balanced batch tiling: TB multiple of 8; padding waste bounded (<8 rows/tile)."""
    b8 = _round_up(B, 8)
    if b8 <= tile_b:
        return b8, b8                                  # single grid step
    n_tiles = -(-B // tile_b)                          # ceil div
    TB = _round_up(-(-B // n_tiles), 8)
    return TB, n_tiles * TB


# -----------------------------------------------------------------------------
# Pallas kernel: full cVAE forward for one batch tile
# -----------------------------------------------------------------------------
def cvae_forward_kernel(
    x_ref,                         # packed [Y | c | eps] : (TB, input_dim + c_dim + L)
    we1_y_ref, we1_c_ref, be1_ref,
    wmu_ref, bmu_ref, wlv_ref, blv_ref,
    wd1_z_ref, wd1_c_ref, bd1_ref,
    wdm_ref, bdm_ref,
    out_ref,                       # packed [mu_z | logvar_z | recon_mu] : (TB, 2L + input_dim)
    *, non_linear: bool, input_dim: int, c_dim: int, compute_dtype,
):
    x = x_ref[...]
    y = x[:, :input_dim]
    c = x[:, input_dim:input_dim + c_dim]
    eps = x[:, input_dim + c_dim:]

    def mm(a, w_ref):
        if compute_dtype is not None:
            a = a.astype(compute_dtype)
        return jnp.dot(a, w_ref[...], preferred_element_type=jnp.float32)

    # Encoder hidden: concat(Y, c) @ We1 + b == Y @ We1_y + c @ We1_c + b
    h = mm(y, we1_y_ref) + mm(c, we1_c_ref) + be1_ref[...]
    if non_linear:
        h = jnp.maximum(h, 0.0)

    # Latent heads
    mu_z = mm(h, wmu_ref) + bmu_ref[...]
    logvar_z = mm(h, wlv_ref) + blv_ref[...]

    # Reparameterise: z = mu + eps * exp(0.5 * logvar)   (exp goes to the EUP slot)
    z = mu_z + eps * jnp.exp(0.5 * logvar_z)

    # Decoder hidden: concat(z, c) @ Wd1 + b == z @ Wd1_z + c @ Wd1_c + b
    h2 = mm(z, wd1_z_ref) + mm(c, wd1_c_ref) + bd1_ref[...]
    if non_linear:
        h2 = jnp.maximum(h2, 0.0)

    # Decoder mean head + clamp
    recon_mu = jnp.clip(mm(h2, wdm_ref) + bdm_ref[...], -1.0e6, 1.0e6)

    # Single lane-packed store (one output DMA per grid step).
    out_ref[...] = jnp.concatenate([mu_z, logvar_z, recon_mu], axis=1)


# -----------------------------------------------------------------------------
# Wrapper
# -----------------------------------------------------------------------------
def cvae_forward(params, Y, c, eps, *, non_linear=False, tile_b=1024, use_bf16=False):
    """Runs the cVAE forward pass. Returns (mu_z, logvar_z, recon_mu, recon_scale)."""
    B, input_dim = Y.shape
    c_dim = c.shape[1]
    H = params["we1_y"].shape[1]
    L = params["wmu"].shape[1]
    Din = input_dim + c_dim + L
    Dout = 2 * L + input_dim

    # --- pack the three narrow inputs into one lane-packed slab ---
    X = jnp.concatenate(
        [Y.astype(jnp.float32), c.astype(jnp.float32), eps.astype(jnp.float32)], axis=1)

    TB, Bp = _choose_tile(B, tile_b)
    if Bp != B:
        X = jnp.pad(X, ((0, Bp - B), (0, 0)))
    grid = (Bp // TB,)

    # Matmul operands optionally bf16 (f32 accumulation); biases stay f32.
    w_dtype = jnp.bfloat16 if use_bf16 else jnp.float32

    def wcast(a):
        return a.astype(w_dtype)

    weights = (
        wcast(params["we1_y"]), wcast(params["we1_c"]), params["be1"],
        wcast(params["wmu"]), params["bmu"], wcast(params["wlv"]), params["blv"],
        wcast(params["wd1_z"]), wcast(params["wd1_c"]), params["bd1"],
        wcast(params["wdm"]), params["bdm"],
    )

    tiled_in = pl.BlockSpec((TB, Din), lambda i: (i, 0))
    tiled_out = pl.BlockSpec((TB, Dout), lambda i: (i, 0))

    def resident(a):
        # Constant block index -> single buffer; double-buffering would be pure VMEM waste.
        return pl.BlockSpec(a.shape, lambda i: (0, 0), pipeline_mode=pl.Buffered(1))

    in_specs = [tiled_in] + [resident(w) for w in weights]

    # --- explicit VMEM budget: 2x-buffered activation tiles + single-buffer weights ---
    act_bytes = 2 * (TB * Din * 4 + TB * Dout * 4)
    w_bytes = sum(int(w.size) * w.dtype.itemsize for w in weights)
    vmem_limit = int(1.5 * (act_bytes + w_bytes)) + (2 << 20)
    vmem_limit = int(min(max(vmem_limit, 16 << 20), 64 << 20))

    # Advisory cost estimate (6 small matmuls, one exp per latent element).
    flops = 2 * Bp * (input_dim * H + c_dim * H + 2 * H * L + L * H + c_dim * H + H * input_dim)
    bytes_accessed = 4 * Bp * (Din + Dout) + w_bytes
    cost = pl.CostEstimate(flops=flops, transcendentals=Bp * L,
                           bytes_accessed=bytes_accessed)

    out = pl.pallas_call(
        functools.partial(cvae_forward_kernel, non_linear=non_linear,
                          input_dim=input_dim, c_dim=c_dim,
                          compute_dtype=(jnp.bfloat16 if use_bf16 else None)),
        grid=grid,
        in_specs=in_specs,
        out_specs=tiled_out,
        out_shape=jax.ShapeDtypeStruct((Bp, Dout), jnp.float32),
        compiler_params=pltpu.CompilerParams(
            dimension_semantics=("parallel",),
            vmem_limit_bytes=vmem_limit),
        cost_estimate=cost,
    )(X, *weights)

    # Un-pad / split the packed output slab (wrapper-side, cheap).
    mu_z = out[:B, :L]
    logvar_z = out[:B, L:2 * L]
    recon_mu = out[:B, 2 * L:]

    # Scale depends only on logvar_out -> computed in plain JAX, broadcast here.
    scale = jnp.exp(0.5 * jnp.clip(params["logvar_out"], -10.0, 10.0)) + 1.0e-6
    recon_scale = jnp.broadcast_to(scale, recon_mu.shape)

    return mu_z, logvar_z, recon_mu, recon_scale


# -----------------------------------------------------------------------------
# Deterministic parameter construction (mimics nn.Linear init shapes)
# -----------------------------------------------------------------------------
def init_params(key, input_dim, hidden, latent_dim, c_dim, init_logvar=-3.0):
    """hidden: list of hidden widths (before appending latent_dim), e.g. [32]."""
    hidden_dim = list(hidden) + [latent_dim]

    def linear(key, fan_in, fan_out):
        k1, k2 = jax.random.split(key)
        bound = 1.0 / np.sqrt(fan_in)
        w = jax.random.uniform(k1, (fan_in, fan_out), jnp.float32, -bound, bound)
        b = jax.random.uniform(k2, (1, fan_out), jnp.float32, -bound, bound)
        return w, b

    keys = jax.random.split(key, 6)
    H = hidden_dim[0]                       # first (and only intermediate) hidden width
    L = hidden_dim[-1]                      # latent dim

    # Encoder: Linear(input_dim + c_dim -> H), heads Linear(H -> L)
    we1, be1 = linear(keys[0], input_dim + c_dim, H)
    wmu, bmu = linear(keys[1], H, L)
    wlv, blv = linear(keys[2], H, L)

    # Decoder: Linear(L + c_dim -> H), mean head Linear(H -> input_dim)
    wd1, bd1 = linear(keys[3], L + c_dim, H)
    wdm, bdm = linear(keys[4], H, input_dim)

    logvar_out = jnp.full((1, input_dim), init_logvar, dtype=jnp.float32)

    return {
        "we1_y": we1[:input_dim, :], "we1_c": we1[input_dim:, :], "be1": be1,
        "wmu": wmu, "bmu": bmu,
        "wlv": wlv, "blv": blv,
        "wd1_z": wd1[:L, :], "wd1_c": wd1[L:, :], "bd1": bd1,
        "wdm": wdm, "bdm": bdm,
        "logvar_out": logvar_out,
    }


# -----------------------------------------------------------------------------
# Pure-JAX reference (for correctness check)
# -----------------------------------------------------------------------------
def cvae_forward_ref(params, Y, c, eps, *, non_linear=False):
    h = Y @ params["we1_y"] + c @ params["we1_c"] + params["be1"]
    if non_linear:
        h = jnp.maximum(h, 0.0)
    mu_z = h @ params["wmu"] + params["bmu"]
    logvar_z = h @ params["wlv"] + params["blv"]
    z = mu_z + eps * jnp.exp(0.5 * logvar_z)
    h2 = z @ params["wd1_z"] + c @ params["wd1_c"] + params["bd1"]
    if non_linear:
        h2 = jnp.maximum(h2, 0.0)
    mu_out = jnp.clip(h2 @ params["wdm"] + params["bdm"], -1.0e6, 1.0e6)
    scale = jnp.exp(0.5 * jnp.clip(params["logvar_out"], -10.0, 10.0)) + 1.0e-6
    return mu_z, logvar_z, mu_out, jnp.broadcast_to(scale, mu_out.shape)


if __name__ == "__main__":
    # Small, module-consistent shapes.
    batch = 24
    input_dim = 16
    hidden = [32]
    latent_dim = 8
    c_dim = 4

    key = jax.random.PRNGKey(0)
    k_param, k_y, k_c, k_eps, k_y2, k_c2, k_eps2 = jax.random.split(key, 7)

    params = init_params(k_param, input_dim, hidden, latent_dim, c_dim)

    Y = jax.random.normal(k_y, (batch, input_dim), jnp.float32)
    c = jax.random.normal(k_c, (batch, c_dim), jnp.float32)
    # reparameterisation noise (torch.randn_like) is drawn outside the kernel and passed in.
    eps = jax.random.normal(k_eps, (batch, latent_dim), jnp.float32)

    # Exact-f32 path: single-tile grid (grid=(1,)) and multi-tile grid with padding.
    for nl in (False, True):
        for tb in (1024, 16):
            outs = jax.block_until_ready(
                cvae_forward(params, Y, c, eps, non_linear=nl, tile_b=tb))
            ref = cvae_forward_ref(params, Y, c, eps, non_linear=nl)
            for got, want in zip(outs, ref):
                np.testing.assert_allclose(np.asarray(got), np.asarray(want),
                                           rtol=1e-5, atol=1e-5)

    # Larger batch exercising balanced tiling with an uneven (padded) last tile.
    B2 = 300
    Y2 = jax.random.normal(k_y2, (B2, input_dim), jnp.float32)
    c2 = jax.random.normal(k_c2, (B2, c_dim), jnp.float32)
    eps2 = jax.random.normal(k_eps2, (B2, latent_dim), jnp.float32)
    outs = jax.block_until_ready(
        cvae_forward(params, Y2, c2, eps2, non_linear=True, tile_b=128))
    ref = cvae_forward_ref(params, Y2, c2, eps2, non_linear=True)
    for got, want in zip(outs, ref):
        np.testing.assert_allclose(np.asarray(got), np.asarray(want),
                                   rtol=1e-5, atol=1e-5)

    # bf16 matmul-operand path (v6e/v7x throughput mode; intentionally not bit-exact).
    outs = jax.block_until_ready(
        cvae_forward(params, Y, c, eps, non_linear=True, tile_b=1024, use_bf16=True))
    ref = cvae_forward_ref(params, Y, c, eps, non_linear=True)
    for got, want in zip(outs, ref):
        np.testing.assert_allclose(np.asarray(got), np.asarray(want),
                                   rtol=5e-2, atol=1e-1)

    print("KERNEL_OK")
</pallas_src>

<mosaic_0001>
module attributes {stable_mosaic.version = 11 : i64} {
  func.func @cvae_forward_kernel(%arg0: i32, %arg1: memref<24x28xf32, #tpu.memory_space<vmem>>, %arg2: memref<16x32xf32, #tpu.memory_space<vmem>>, %arg3: memref<4x32xf32, #tpu.memory_space<vmem>>, %arg4: memref<1x32xf32, #tpu.memory_space<vmem>>, %arg5: memref<32x8xf32, #tpu.memory_space<vmem>>, %arg6: memref<1x8xf32, #tpu.memory_space<vmem>>, %arg7: memref<32x8xf32, #tpu.memory_space<vmem>>, %arg8: memref<1x8xf32, #tpu.memory_space<vmem>>, %arg9: memref<8x32xf32, #tpu.memory_space<vmem>>, %arg10: memref<4x32xf32, #tpu.memory_space<vmem>>, %arg11: memref<1x32xf32, #tpu.memory_space<vmem>>, %arg12: memref<32x16xf32, #tpu.memory_space<vmem>>, %arg13: memref<1x16xf32, #tpu.memory_space<vmem>>, %arg14: memref<24x32xf32, #tpu.memory_space<vmem>>) attributes {dimension_semantics = [#tpu.dimension_semantics<parallel>], iteration_bounds = array<i64: 1>, scalar_prefetch = 0 : i64, scratch_operands = 0 : i64, tpu.core_type = #tpu.core_type<tc>, window_params = [{transform_indices = @transform_0, window_bounds = array<i64: 24, 28>}, {pipeline_mode = #tpu.pipeline_mode<synchronous>, transform_indices = @transform_1, window_bounds = array<i64: 16, 32>}, {pipeline_mode = #tpu.pipeline_mode<synchronous>, transform_indices = @transform_2, window_bounds = array<i64: 4, 32>}, {pipeline_mode = #tpu.pipeline_mode<synchronous>, transform_indices = @transform_3, window_bounds = array<i64: 1, 32>}, {pipeline_mode = #tpu.pipeline_mode<synchronous>, transform_indices = @transform_4, window_bounds = array<i64: 32, 8>}, {pipeline_mode = #tpu.pipeline_mode<synchronous>, transform_indices = @transform_5, window_bounds = array<i64: 1, 8>}, {pipeline_mode = #tpu.pipeline_mode<synchronous>, transform_indices = @transform_6, window_bounds = array<i64: 32, 8>}, {pipeline_mode = #tpu.pipeline_mode<synchronous>, transform_indices = @transform_7, window_bounds = array<i64: 1, 8>}, {pipeline_mode = #tpu.pipeline_mode<synchronous>, transform_indices = @transform_8, window_bounds = array<i64: 8, 32>}, {pipeline_mode = #tpu.pipeline_mode<synchronous>, transform_indices = @transform_9, window_bounds = array<i64: 4, 32>}, {pipeline_mode = #tpu.pipeline_mode<synchronous>, transform_indices = @transform_10, window_bounds = array<i64: 1, 32>}, {pipeline_mode = #tpu.pipeline_mode<synchronous>, transform_indices = @transform_11, window_bounds = array<i64: 32, 16>}, {pipeline_mode = #tpu.pipeline_mode<synchronous>, transform_indices = @transform_12, window_bounds = array<i64: 1, 16>}, {transform_indices = @transform_13, window_bounds = array<i64: 24, 32>}]} {
    %c0 = arith.constant 0 : index
    %c0_0 = arith.constant 0 : index
    %0 = vector.load %arg1[%c0, %c0_0] : memref<24x28xf32, #tpu.memory_space<vmem>>, vector<24x28xf32>
    %1 = vector.extract_strided_slice %0 {offsets = [0, 0], sizes = [24, 16], strides = [1, 1]} : vector<24x28xf32> to vector<24x16xf32>
    %2 = vector.extract_strided_slice %0 {offsets = [0, 16], sizes = [24, 4], strides = [1, 1]} : vector<24x28xf32> to vector<24x4xf32>
    %3 = vector.extract_strided_slice %0 {offsets = [0, 20], sizes = [24, 8], strides = [1, 1]} : vector<24x28xf32> to vector<24x8xf32>
    %c0_1 = arith.constant 0 : index
    %c0_2 = arith.constant 0 : index
    %4 = vector.load %arg2[%c0_1, %c0_2] : memref<16x32xf32, #tpu.memory_space<vmem>>, vector<16x32xf32>
    %cst = arith.constant dense<0.000000e+00> : vector<24x32xf32>
    %5 = tpu.matmul %1, %4, %cst {dimension_numbers = #tpu.dot_dimension_numbers<[1], [0], [0], [1], [0, 0, 1, 1], [], []>} : vector<24x16xf32>, vector<16x32xf32>, vector<24x32xf32> -> vector<24x32xf32>
    %c0_3 = arith.constant 0 : index
    %c0_4 = arith.constant 0 : index
    %6 = vector.load %arg3[%c0_3, %c0_4] : memref<4x32xf32, #tpu.memory_space<vmem>>, vector<4x32xf32>
    %cst_5 = arith.constant dense<0.000000e+00> : vector<24x32xf32>
    %7 = tpu.matmul %2, %6, %cst_5 {dimension_numbers = #tpu.dot_dimension_numbers<[1], [0], [0], [1], [0, 0, 1, 1], [], []>} : vector<24x4xf32>, vector<4x32xf32>, vector<24x32xf32> -> vector<24x32xf32>
    %8 = arith.addf %5, %7 : vector<24x32xf32>
    %c0_6 = arith.constant 0 : index
    %c0_7 = arith.constant 0 : index
    %9 = vector.load %arg4[%c0_6, %c0_7] : memref<1x32xf32, #tpu.memory_space<vmem>>, vector<1x32xf32>
    %10 = vector.broadcast %9 : vector<1x32xf32> to vector<24x32xf32>
    %11 = arith.addf %8, %10 : vector<24x32xf32>
    %c0_8 = arith.constant 0 : index
    %c0_9 = arith.constant 0 : index
    %12 = vector.load %arg5[%c0_8, %c0_9] : memref<32x8xf32, #tpu.memory_space<vmem>>, vector<32x8xf32>
    %cst_10 = arith.constant dense<0.000000e+00> : vector<24x8xf32>
    %13 = tpu.matmul %11, %12, %cst_10 {dimension_numbers = #tpu.dot_dimension_numbers<[1], [0], [0], [1], [0, 0, 1, 1], [], []>} : vector<24x32xf32>, vector<32x8xf32>, vector<24x8xf32> -> vector<24x8xf32>
    %c0_11 = arith.constant 0 : index
    %c0_12 = arith.constant 0 : index
    %14 = vector.load %arg6[%c0_11, %c0_12] : memref<1x8xf32, #tpu.memory_space<vmem>>, vector<1x8xf32>
    %15 = vector.broadcast %14 : vector<1x8xf32> to vector<24x8xf32>
    %16 = arith.addf %13, %15 : vector<24x8xf32>
    %c0_13 = arith.constant 0 : index
    %c0_14 = arith.constant 0 : index
    %17 = vector.load %arg7[%c0_13, %c0_14] : memref<32x8xf32, #tpu.memory_space<vmem>>, vector<32x8xf32>
    %cst_15 = arith.constant dense<0.000000e+00> : vector<24x8xf32>
    %18 = tpu.matmul %11, %17, %cst_15 {dimension_numbers = #tpu.dot_dimension_numbers<[1], [0], [0], [1], [0, 0, 1, 1], [], []>} : vector<24x32xf32>, vector<32x8xf32>, vector<24x8xf32> -> vector<24x8xf32>
    %c0_16 = arith.constant 0 : index
    %c0_17 = arith.constant 0 : index
    %19 = vector.load %arg8[%c0_16, %c0_17] : memref<1x8xf32, #tpu.memory_space<vmem>>, vector<1x8xf32>
    %20 = vector.broadcast %19 : vector<1x8xf32> to vector<24x8xf32>
    %21 = arith.addf %18, %20 : vector<24x8xf32>
    %cst_18 = arith.constant 5.000000e-01 : f32
    %22 = vector.broadcast %cst_18 : f32 to vector<24x8xf32>
    %23 = arith.mulf %22, %21 : vector<24x8xf32>
    %24 = math.exp %23 : vector<24x8xf32>
    %25 = arith.mulf %3, %24 : vector<24x8xf32>
    %26 = arith.addf %16, %25 : vector<24x8xf32>
    %c0_19 = arith.constant 0 : index
    %c0_20 = arith.constant 0 : index
    %27 = vector.load %arg9[%c0_19, %c0_20] : memref<8x32xf32, #tpu.memory_space<vmem>>, vector<8x32xf32>
    %cst_21 = arith.constant dense<0.000000e+00> : vector<24x32xf32>
    %28 = tpu.matmul %26, %27, %cst_21 {dimension_numbers = #tpu.dot_dimension_numbers<[1], [0], [0], [1], [0, 0, 1, 1], [], []>} : vector<24x8xf32>, vector<8x32xf32>, vector<24x32xf32> -> vector<24x32xf32>
    %c0_22 = arith.constant 0 : index
    %c0_23 = arith.constant 0 : index
    %29 = vector.load %arg10[%c0_22, %c0_23] : memref<4x32xf32, #tpu.memory_space<vmem>>, vector<4x32xf32>
    %cst_24 = arith.constant dense<0.000000e+00> : vector<24x32xf32>
    %30 = tpu.matmul %2, %29, %cst_24 {dimension_numbers = #tpu.dot_dimension_numbers<[1], [0], [0], [1], [0, 0, 1, 1], [], []>} : vector<24x4xf32>, vector<4x32xf32>, vector<24x32xf32> -> vector<24x32xf32>
    %31 = arith.addf %28, %30 : vector<24x32xf32>
    %c0_25 = arith.constant 0 : index
    %c0_26 = arith.constant 0 : index
    %32 = vector.load %arg11[%c0_25, %c0_26] : memref<1x32xf32, #tpu.memory_space<vmem>>, vector<1x32xf32>
    %33 = vector.broadcast %32 : vector<1x32xf32> to vector<24x32xf32>
    %34 = arith.addf %31, %33 : vector<24x32xf32>
    %c0_27 = arith.constant 0 : index
    %c0_28 = arith.constant 0 : index
    %35 = vector.load %arg12[%c0_27, %c0_28] : memref<32x16xf32, #tpu.memory_space<vmem>>, vector<32x16xf32>
    %cst_29 = arith.constant dense<0.000000e+00> : vector<24x16xf32>
    %36 = tpu.matmul %34, %35, %cst_29 {dimension_numbers = #tpu.dot_dimension_numbers<[1], [0], [0], [1], [0, 0, 1, 1], [], []>} : vector<24x32xf32>, vector<32x16xf32>, vector<24x16xf32> -> vector<24x16xf32>
    %c0_30 = arith.constant 0 : index
    %c0_31 = arith.constant 0 : index
    %37 = vector.load %arg13[%c0_30, %c0_31] : memref<1x16xf32, #tpu.memory_space<vmem>>, vector<1x16xf32>
    %38 = vector.broadcast %37 : vector<1x16xf32> to vector<24x16xf32>
    %39 = arith.addf %36, %38 : vector<24x16xf32>
    %cst_32 = arith.constant -1.000000e+06 : f32
    %cst_33 = arith.constant 1.000000e+06 : f32
    %40 = vector.broadcast %cst_32 : f32 to vector<24x16xf32>
    %41 = arith.maximumf %40, %39 : vector<24x16xf32>
    %42 = vector.broadcast %cst_33 : f32 to vector<24x16xf32>
    %43 = arith.minimumf %42, %41 : vector<24x16xf32>
    %44 = tpu.concatenate %16, %21, %43 in 1 : vector<24x8xf32>, vector<24x8xf32>, vector<24x16xf32> -> vector<24x32xf32>
    %c0_34 = arith.constant 0 : index
    %c0_35 = arith.constant 0 : index
    %45 = vector.load %arg14[%c0_34, %c0_35] : memref<24x32xf32, #tpu.memory_space<vmem>>, vector<24x32xf32>
    tpu.vector_store %arg14[%c0_34, %c0_35], %44 {strides = array<i32>} : memref<24x32xf32, #tpu.memory_space<vmem>>, vector<24x32xf32>,
    return
  }
  func.func @transform_0(%arg0: i32) -> (i32, i32) {
    %c0_i32 = arith.constant 0 : i32
    %c0_i32_0 = arith.constant 0 : i32
    return %arg0, %c0_i32 : i32, i32
  }
  func.func @transform_1(%arg0: i32) -> (i32, i32) {
    %c0_i32 = arith.constant 0 : i32
    %c0_i32_0 = arith.constant 0 : i32
    %c0_i32_1 = arith.constant 0 : i32
    return %c0_i32, %c0_i32_0 : i32, i32
  }
  func.func @transform_2(%arg0: i32) -> (i32, i32) {
    %c0_i32 = arith.constant 0 : i32
    %c0_i32_0 = arith.constant 0 : i32
    %c0_i32_1 = arith.constant 0 : i32
    return %c0_i32, %c0_i32_0 : i32, i32
  }
  func.func @transform_3(%arg0: i32) -> (i32, i32) {
    %c0_i32 = arith.constant 0 : i32
    %c0_i32_0 = arith.constant 0 : i32
    %c0_i32_1 = arith.constant 0 : i32
    return %c0_i32, %c0_i32_0 : i32, i32
  }
  func.func @transform_4(%arg0: i32) -> (i32, i32) {
    %c0_i32 = arith.constant 0 : i32
    %c0_i32_0 = arith.constant 0 : i32
    %c0_i32_1 = arith.constant 0 : i32
    return %c0_i32, %c0_i32_0 : i32, i32
  }
  func.func @transform_5(%arg0: i32) -> (i32, i32) {
    %c0_i32 = arith.constant 0 : i32
    %c0_i32_0 = arith.constant 0 : i32
    %c0_i32_1 = arith.constant 0 : i32
    return %c0_i32, %c0_i32_0 : i32, i32
  }
  func.func @transform_6(%arg0: i32) -> (i32, i32) {
    %c0_i32 = arith.constant 0 : i32
    %c0_i32_0 = arith.constant 0 : i32
    %c0_i32_1 = arith.constant 0 : i32
    return %c0_i32, %c0_i32_0 : i32, i32
  }
  func.func @transform_7(%arg0: i32) -> (i32, i32) {
    %c0_i32 = arith.constant 0 : i32
    %c0_i32_0 = arith.constant 0 : i32
    %c0_i32_1 = arith.constant 0 : i32
    return %c0_i32, %c0_i32_0 : i32, i32
  }
  func.func @transform_8(%arg0: i32) -> (i32, i32) {
    %c0_i32 = arith.constant 0 : i32
    %c0_i32_0 = arith.constant 0 : i32
    %c0_i32_1 = arith.constant 0 : i32
    return %c0_i32, %c0_i32_0 : i32, i32
  }
  func.func @transform_9(%arg0: i32) -> (i32, i32) {
    %c0_i32 = arith.constant 0 : i32
    %c0_i32_0 = arith.constant 0 : i32
    %c0_i32_1 = arith.constant 0 : i32
    return %c0_i32, %c0_i32_0 : i32, i32
  }
  func.func @transform_10(%arg0: i32) -> (i32, i32) {
    %c0_i32 = arith.constant 0 : i32
    %c0_i32_0 = arith.constant 0 : i32
    %c0_i32_1 = arith.constant 0 : i32
    return %c0_i32, %c0_i32_0 : i32, i32
  }
  func.func @transform_11(%arg0: i32) -> (i32, i32) {
    %c0_i32 = arith.constant 0 : i32
    %c0_i32_0 = arith.constant 0 : i32
    %c0_i32_1 = arith.constant 0 : i32
    return %c0_i32, %c0_i32_0 : i32, i32
  }
  func.func @transform_12(%arg0: i32) -> (i32, i32) {
    %c0_i32 = arith.constant 0 : i32
    %c0_i32_0 = arith.constant 0 : i32
    %c0_i32_1 = arith.constant 0 : i32
    return %c0_i32, %c0_i32_0 : i32, i32
  }
  func.func @transform_13(%arg0: i32) -> (i32, i32) {
    %c0_i32 = arith.constant 0 : i32
    %c0_i32_0 = arith.constant 0 : i32
    return %arg0, %c0_i32 : i32, i32
  }
}

</mosaic_0001>

<bundles_post_ra>
// kernel: tpu_custom_call.1
= control target key start
LH: loop header
LB: loop body
LE: loop exit
PB: predicated region body
PF: predicated region fallthrough
CT: control target
= control target key end

     0   :  { %vm67_vm0 = vcmask 1043456   ;;  %s1048_s29 = smov 112   ;;  %v1049_v4 = vmov 0.0   ;;  %vm1050_vm1 = vmmov 0   ;;  %s1344_s0 = inlined_call_operand.vmem [shape: f32[24,28], index: 0, kind: input, shape index: {}]   ;;  %s1345_s1 = inlined_call_operand.vmem [shape: f32[16,32], index: 1, kind: input, shape index: {}]   ;;  %s1346_s2 = inlined_call_operand.vmem [shape: f32[4,32], index: 2, kind: input, shape index: {}]   ;;  %s1347_s3 = inlined_call_operand.vmem [shape: f32[1,32], index: 3, kind: input, shape index: {}]   ;;  %s1348_s4 = inlined_call_operand.vmem [shape: f32[32,8], index: 4, kind: input, shape index: {}]   ;;  %s1349_s5 = inlined_call_operand.vmem [shape: f32[1,8], index: 5, kind: input, shape index: {}]   ;;  %s1350_s6 = inlined_call_operand.vmem [shape: f32[32,8], index: 6, kind: input, shape index: {}]   ;;  %s1351_s7 = inlined_call_operand.vmem [shape: f32[1,8], index: 7, kind: input, shape index: {}]   ;;  %s1352_s8 = inlined_call_operand.vmem [shape: f32[8,32], index: 8, kind: input, shape index: {}]   ;;  %s1353_s9 = inlined_call_operand.vmem [shape: f32[4,32], index: 9, kind: input, shape index: {}]   ;;  %s1354_s10 = inlined_call_operand.vmem [shape: f32[1,32], index: 10, kind: input, shape index: {}]   ;;  %s1355_s11 = inlined_call_operand.vmem [shape: f32[32,16], index: 11, kind: input, shape index: {}]   ;;  %s1356_s12 = inlined_call_operand.vmem [shape: f32[1,16], index: 12, kind: input, shape index: {}]   ;;  %s1357_s13 = inlined_call_operand.hbm [shape: f32[24,32], index: 13, kind: output, shape index: {}]  }
   0x1   :  { %v1131_v0 = vld [vmem:[%s1344_s0 + $0x10] sm:$0xff]  ;;  %v1136_v1 = vld [vmem:[%s1344_s0 + $0x8] sm:$0xff]  ;;  %v50_v2 = vld [vmem:[%s1346_s2] sm:$0xf]  ;;  %1006 = vmatprep.subr.mxu1 %v1049_v4  ;;  %896 = vmatprep.mubr.msk.f32.mxu1 %vm1050_vm1, %v1049_v4 }
   0x2   :  { %58 = vrot.lane.b32.xlu0 %v1131_v0, %s1048_s29  ;;  %56 = vrot.lane.b32.xlu1 %v1136_v1, %s1048_s29  ;;  %v1146_v3 = vld [vmem:[%s1344_s0] sm:$0xff] }
   0x3   :  { %1007 = vmatpush3.msk.msra.mxu1 %vm67_vm0, %v50_v2  ;;  %888 = vmatprep.subr.mxu0 %v1049_v4 }
   0x4   :  { %18 = vsyncpa [#allocation3], 0  ;;  %v1051_v5 = vmov 0.0|0.0   ;;  %889 = vmatpush3.msk.msra.mxu0 %vm67_vm0, %v50_v2  ;;  %890 = vmatprep.mubr.msk.f32.mxu0 %vm1050_vm1, %v1049_v4  ;;  %v48_v6 = vld [vmem:[%s1345_s1] sm:$0xff]  ;;  %v49_v7 = vld [vmem:[%s1345_s1 + $0x8] sm:$0xff]  ;;  %vm60_vm2 = vcmask 31744  }
   0x5   :  { %985 = vmatprep.subr.bf16.mxu1 %v1051_v5  ;;  %988 = vmatprep.subr.bf16.mxu0 %v1051_v5  ;;  %v986_v8 = vpack.c.bf16 %v49_v7, %v48_v6  ;;  %v349_v10 = vld [vmem:[%s1350_s6] sm:$0xff]  ;;  %v350_v11 = vld [vmem:[%s1350_s6 + $0x8] sm:$0xff]  ;;  %vm151_vm3 = vcmask 130048   ;;  %v351_v18 = vld [vmem:[%s1350_s6 + $0x10] sm:$0xff]  ;;  %vm259_vm4 = vcmask 261120   ;;  %s1053_s23 = smov 108  }
   0x6   :  { %54 = vrot.lane.b32.xlu0 %v1146_v3, %s1048_s29  ;;  %v995_v12 = vpack.c.bf16 %v350_v11, %v349_v10  ;;  %v248_v15 = vld [vmem:[%s1348_s4] sm:$0xff]  ;;  %v249_v16 = vld [vmem:[%s1348_s4 + $0x8] sm:$0xff]  ;;  %v352_v19 = vld [vmem:[%s1350_s6 + $0x18] sm:$0xff]  ;;  %s1054_s26 = smov 8   ;;  %vm564_vm5 = vcmask 64512   ;;  %s1055_s30 = smov 16  }
   0x7   :  { %v989_v17 = vpack.c.bf16 %v249_v16, %v248_v15  ;;  %v998_v20 = vpack.c.bf16 %v352_v19, %v351_v18  ;;  %v250_v21 = vld [vmem:[%s1348_s4 + $0x10] sm:$0xff]  ;;  %v251_v22 = vld [vmem:[%s1348_s4 + $0x18] sm:$0xff]  ;;  %v826_v28 = vld [vmem:[%s1347_s3] ss:$0 sm:$0xff] }
   0x8   :  { %v992_v23 = vpack.c.bf16 %v251_v22, %v250_v21  ;;  %v480_v35 = vld [vmem:[%s1353_s9] sm:$0xf]  ;;  %v666_v21 = vld [vmem:[%s1355_s11 + $0x10] sm:$0xff] }
   0x9   :  { %v831_v44 = vld [vmem:[%s1351_s7] ss:$0 sm:$0xff]  ;;  %s1052_s7 = smov 20  }
   0xa   :  { %v664_v19 = vld [vmem:[%s1355_s11] sm:$0xff] }
  0x74   :  { %v1165_v9 = vpop.permute.xlu0 %58  ;;  %v1184_v14 = vpop.permute.xlu1 %56 }
  0x75   :  { %897 = vmatmul.mubr.msk.f32.vlgmr.msra.gmra.mrb[0].mxu1 %vm60_vm2, %v1165_v9 }
  0x76   :  { %987 = vmatpush3.bf16.msra.mxu1 %v986_v8  ;;  %903 = vmatprep.mubr.msk.f32.mxu1 %vm1050_vm1, %v1049_v4 }
  0x77   :  { %994 = vmatprep.subr.bf16.mxu1 %v1051_v5 }
  0x78   :  { %v1178_v13 = vpop.permute.xlu0 %54 }
  0x79   :  { %891 = vmatmul.mubr.msk.f32.vlgmr.msra.gmra.mrb[0].mxu0 %vm60_vm2, %v1178_v13  ;;  %904 = vmatmul.mubr.msk.f32.vlgmr.msra.gmra.mrb[2].mxu1 %vm151_vm3, %v1146_v3 }
  0x7a   :  { %893 = vmatprep.mubr.msk.f32.mxu0 %vm1050_vm1, %v1049_v4  ;;  %906 = vmatprep.mubr.msk.f32.mxu1 %vm1050_vm1, %v1049_v4 }
  0x7b   :  { %996 = vmatpush3.bf16.msra.mxu1 %v995_v12  ;;  %990 = vmatpush3.bf16.msra.mxu0 %v989_v17  ;;  %v479_v12 = vld [vmem:[%s1352_s8] sm:$0xff] }
  0x7c   :  { %997 = vmatprep.subr.bf16.mxu1 %v1051_v5  ;;  %991 = vmatprep.subr.bf16.mxu0 %v1051_v5 }
  0x7d   :  { %894 = vmatmul.mubr.msk.f32.gmra.mrb[2].mxu0 %vm60_vm2, %v1184_v14  ;;  %907 = vmatmul.mubr.msk.f32.gmra.mrb[4].mxu1 %vm151_vm3, %v1136_v1 }
  0x7e   :  { %909 = vmatprep.mubr.msk.f32.mxu1 %vm1050_vm1, %v1049_v4  ;;  %920 = vmatprep.mubr.msk.f32.mxu0 %vm1050_vm1, %v1049_v4 }
  0x7f   :  { %999 = vmatpush3.bf16.msra.mxu1 %v998_v20  ;;  %993 = vmatpush3.bf16.msra.mxu0 %v992_v23  ;;  %v665_v20 = vld [vmem:[%s1355_s11 + $0x8] sm:$0xff]  ;;  %v667_v23 = vld [vmem:[%s1355_s11 + $0x18] sm:$0xff] }
  0x80   :  { %957 = vmatprep.subr.mxu1 %v1049_v4  ;;  %946 = vmatprep.subr.mxu0 %v1049_v4  ;;  %v1001_v22 = vpack.c.bf16 %v665_v20, %v664_v19 }
  0x81   :  { %910 = vmatmul.mubr.msk.f32.gmra.mrb[6].mxu1 %vm151_vm3, %v1131_v0 }
  0x82   :  { %937 = vmatprep.mubr.msk.f32.mxu1 %vm1050_vm1, %v1049_v4 }
 0x148   :  { %v147_v24 = vpop.f32.mrb[0].mxu1 }
 0x149   :  { %v898_v25 = vpop.f32.mrb[1].mxu1 }
 0x14a   :  { %v1004_v25 = vpack.c.bf16 %v667_v23, %v666_v21 }
 0x14c   :  { %v137_v26 = vpop.f32.mrb[0].mxu0  ;;  %v224_v27 = vpop.f32.mrb[2].mxu1 }
 0x14d   :  { %v225_v29 = vadd.f32 %v224_v27, %v137_v26  ;;  %v892_v30 = vpop.f32.mrb[1].mxu0  ;;  %v905_v31 = vpop.f32.mrb[3].mxu1 }
 0x14f   :  { %v245_v32 = vadd.f32 %v826_v28, %v225_v29 }
 0x150   :  { %v142_v33 = vpop.f32.mrb[2].mxu0  ;;  %v229_v34 = vpop.f32.mrb[4].mxu1 }
 0x151   :  { %v230_v36 = vadd.f32 %v229_v34, %v142_v33  ;;  %v895_v37 = vpop.f32.mrb[3].mxu0  ;;  %v908_v38 = vpop.f32.mrb[5].mxu1  ;;  %921 = vmatmul.mubr.msk.f32.vlgmr.msra.gmra.mrb[4].mxu0 %vm259_vm4, %v245_v32  ;;  %938 = vmatmul.mubr.msk.f32.vlgmr.msra.gmra.mrb[8].mxu1 %vm259_vm4, %v245_v32 }
 0x152   :  { %923 = vmatprep.mubr.msk.f32.mxu0 %vm1050_vm1, %v1049_v4  ;;  %940 = vmatprep.mubr.msk.f32.mxu1 %vm1050_vm1, %v1049_v4 }
 0x153   :  { %v246_v39 = vadd.f32 %v826_v28, %v230_v36  ;;  %947 = vmatpush3.msk.msra.mxu0 %vm67_vm0, %v480_v35  ;;  %958 = vmatpush3.msra.mxu1 %v479_v12 }
 0x154   :  { %v234_v40 = vpop.f32.mrb[6].mxu1  ;;  %1000 = vmatprep.subr.bf16.mxu0 %v1051_v5 }
 0x155   :  { %v235_v41 = vadd.f32 %v234_v40, %v147_v24  ;;  %v911_v42 = vpop.f32.mrb[7].mxu1  ;;  %924 = vmatmul.mubr.msk.f32.gmra.mrb[6].mxu0 %vm259_vm4, %v246_v39  ;;  %941 = vmatmul.mubr.msk.f32.gmra.mrb[10].mxu1 %vm259_vm4, %v246_v39 }
 0x156   :  { %926 = vmatprep.mubr.msk.f32.mxu0 %vm1050_vm1, %v1049_v4  ;;  %943 = vmatprep.mubr.msk.f32.mxu1 %vm1050_vm1, %v1049_v4  ;;  %v842_v42 = vld [vmem:[%s1354_s10] ss:$0 sm:$0xff] }
 0x157   :  { %v247_v43 = vadd.f32 %v826_v28, %v235_v41 }
 0x159   :  { %927 = vmatmul.mubr.msk.f32.gmra.mrb[8].mxu0 %vm259_vm4, %v247_v43  ;;  %944 = vmatmul.mubr.msk.f32.gmra.mrb[12].mxu1 %vm259_vm4, %v247_v43 }
 0x15a   :  { %948 = vmatprep.mubr.msk.f32.mxu0 %vm1050_vm1, %v1049_v4  ;;  %959 = vmatprep.mubr.msk.f32.mxu1 %vm1050_vm1, %v1049_v4 }
 0x15d   :  { %949 = vmatmul.mubr.msk.f32.vlgmr.msra.gmra.mrb[10].mxu0 %vm60_vm2, %v1178_v13 }
 0x15e   :  { %951 = vmatprep.mubr.msk.f32.mxu0 %vm1050_vm1, %v1049_v4  ;;  %1002 = vmatpush3.bf16.msra.mxu0 %v1001_v22 }
 0x15f   :  { %1003 = vmatprep.subr.bf16.mxu0 %v1051_v5 }
 0x161   :  { %952 = vmatmul.mubr.msk.f32.gmra.mrb[12].mxu0 %vm60_vm2, %v1184_v14 }
 0x162   :  { %954 = vmatprep.mubr.msk.f32.mxu0 %vm1050_vm1, %v1049_v4  ;;  %1005 = vmatpush3.bf16.msra.mxu0 %v1004_v25 }
 0x165   :  { %955 = vmatmul.mubr.msk.f32.gmra.mrb[14].mxu0 %vm60_vm2, %v1165_v9 }
 0x166   :  { %976 = vmatprep.mubr.msk.f32.mxu0 %vm1050_vm1, %v1049_v4 }
 0x224   :  { %v1265_v45 = vpop.f32.mrb[4].mxu0  ;;  %v426_v46 = vpop.f32.mrb[8].mxu1 }
 0x225   :  { %v427_v47 = vadd.f32 %v831_v44, %v426_v46  ;;  %v922_v48 = vpop.f32.mrb[5].mxu0  ;;  %v939_v49 = vpop.f32.mrb[9].mxu1 }
 0x227   :  { %v440_v50 = vmul.f32 0.5, %v427_v47 }
 0x228   :  { %v340_v51 = vpop.f32.mrb[6].mxu0  ;;  %v431_v52 = vpop.f32.mrb[10].mxu1 }
 0x229   :  { %v443_v53 = vmul.f32 1.442695, %v440_v50  ;;  %v432_v54 = vadd.f32 %v831_v44, %v431_v52  ;;  %v925_v55 = vpop.f32.mrb[7].mxu0  ;;  %v942_v56 = vpop.f32.mrb[11].mxu1 }
 0x22b   :  { %1018 = vpow2.f32 %v443_v53  ;;  %v441_v57 = vmul.f32 0.5, %v432_v54 }
 0x22c   :  { %v345_v58 = vpop.f32.mrb[8].mxu0  ;;  %v436_v59 = vpop.f32.mrb[12].mxu1 }
 0x22d   :  { %v445_v60 = vmul.f32 1.442695, %v441_v57  ;;  %v437_v61 = vadd.f32 %v831_v44, %v436_v59  ;;  %v928_v62 = vpop.f32.mrb[9].mxu0  ;;  %v945_v63 = vpop.f32.mrb[13].mxu1 }
 0x22f   :  { %1020 = vpow2.f32 %v445_v60  ;;  %v442_v2 = vmul.f32 0.5, %v437_v61 }
 0x230   :  { %v1267_v6 = vpop.f32.mrb[10].mxu0 }
 0x231   :  { %v447_v7 = vmul.f32 1.442695, %v442_v2  ;;  %v950_v8 = vpop.f32.mrb[11].mxu0 }
 0x233   :  { %1022 = vpow2.f32 %v447_v7 }
 0x234   :  { %v1269_v9 = vpop.f32.mrb[12].mxu0 }
 0x235   :  { %v1019_v10 = vpop.eup %1018  ;;  %v953_v11 = vpop.f32.mrb[13].mxu0 }
 0x236   :  { %452 = vrot.lane.b32.xlu1 %v1019_v10, %s1052_s7 }
 0x238   :  { %v1274_v13 = vpop.f32.mrb[14].mxu0 }
 0x239   :  { %v1021_v14 = vpop.eup %1020  ;;  %v956_v15 = vpop.f32.mrb[15].mxu0 }
 0x23a   :  { %454 = vrot.lane.b32.xlu0 %v1021_v14, %s1052_s7 }
 0x23d   :  { %v1023_v16 = vpop.eup %1022 }
 0x23e   :  { %456 = vrot.lane.b32.xlu1 %v1023_v16, %s1052_s7 }
 0x2a8   :  { %v453_v17 = vpop.permute.xlu1 %452 }
 0x2a9   :  { %v461_v18 = vmul.f32 %v453_v17, %v1146_v3 }
 0x2ab   :  { %467 = vrot.lane.b32.xlu0 %v461_v18, %s1053_s23 }
 0x2ac   :  { %v455_v3 = vpop.permute.xlu0 %454 }
 0x2ad   :  { %v462_v24 = vmul.f32 %v455_v3, %v1136_v1  ;;  %v827_v1 = vld [vmem:[%s1349_s5] ss:$0 sm:$0xff] }
 0x2ae   :  { %v336_v28 = vadd.f32 %v827_v1, %v1265_v45  ;;  %v341_v30 = vadd.f32 %v827_v1, %v340_v51  ;;  %v346_v32 = vadd.f32 %v827_v1, %v345_v58 }
 0x2af   :  { %469 = vrot.lane.b32.xlu1 %v462_v24, %s1053_s23 }
 0x2b0   :  { %v457_v26 = vpop.permute.xlu1 %456 }
 0x2b1   :  { %v463_v27 = vmul.f32 %v457_v26, %v1131_v0 }
 0x2b3   :  { %773 = vrot.lane.b32.xlu1 %v427_v47, %s1054_s26  ;;  %471 = vrot.lane.b32.xlu0 %v463_v27, %s1053_s23 }
 0x2b7   :  { %777 = vrot.lane.b32.xlu1 %v437_v61, %s1054_s26  ;;  %775 = vrot.lane.b32.xlu0 %v432_v54, %s1054_s26  ;;  %v843_v54 = vld [vmem:[%s1356_s12] ss:$0 sm:$0xff]  ;;  %s1056_s12 = smov [#allocation2]  }
 0x2b8   :  { %s808_s14 = sshll.u32 %s1056_s12, 4  ;;  %s809_s14 = int_to_ptr.vmem [resolvable:$true] %s808_s14 }
 0x2b9   :  { %s1024_s15 = scalar_lea.vmem %s809_s14, 384  ;;  %p1029_p1 = scmp.lt.s32.totalorder %s809_s14, %s809_s14 }
 0x2ba   :  { %p1025_p0 = scmp.ne.s32.totalorder %s809_s14, %s1024_s15  ;;  %p1030_p2 = scmp.lt.s32.totalorder %s1024_s15, %s1024_s15 }
 0x2bc   :  { %p1031_p3 = por %p1030_p2, %p1029_p1 }
 0x2be   :  { %p1032_p4 = pnand %p1031_p3, %p1025_p0 }
 0x31d   :  { %v468_v5 = vpop.permute.xlu0 %467 }
 0x31e   :  { %v476_v29 = vadd.f32 %v468_v5, %v336_v28 }
 0x320   :  { %960 = vmatmul.mubr.msk.f32.vlgmr.msra.gmra.mrb[14].mxu1 %vm564_vm5, %v476_v29 }
 0x321   :  { %v470_v0 = vpop.permute.xlu1 %469  ;;  %962 = vmatprep.mubr.msk.f32.mxu1 %vm1050_vm1, %v1049_v4 }
 0x322   :  { %v477_v31 = vadd.f32 %v470_v0, %v341_v30 }
 0x324   :  { %963 = vmatmul.mubr.msk.f32.gmra.mrb[16].mxu1 %vm564_vm5, %v477_v31 }
 0x325   :  { %v472_v33 = vpop.permute.xlu0 %471  ;;  %v774_v34 = vpop.permute.xlu1 %773  ;;  %965 = vmatprep.mubr.msk.f32.mxu1 %vm1050_vm1, %v1049_v4 }
 0x326   :  { %v478_v35 = vadd.f32 %v472_v33, %v346_v32  ;;  %v794_v36 = vsel %vm564_vm5, %v336_v28, %v774_v34 }
 0x328   :  { %966 = vmatmul.mubr.msk.f32.gmra.mrb[18].mxu1 %vm564_vm5, %v478_v35 }
 0x329   :  { %v776_v37 = vpop.permute.xlu0 %775  ;;  %v778_v38 = vpop.permute.xlu1 %777 }
 0x32a   :  { %v795_v39 = vsel %vm564_vm5, %v341_v30, %v776_v37  ;;  %v796_v40 = vsel %vm564_vm5, %v346_v32, %v778_v38 }
 0x3f3   :  { %v640_v41 = vpop.f32.mrb[14].mxu1 }
 0x3f4   :  { %v641_v43 = vadd.f32 %v640_v41, %v1267_v6  ;;  %v961_v44 = vpop.f32.mrb[15].mxu1 }
 0x3f6   :  { %v661_v45 = vadd.f32 %v842_v42, %v641_v43 }
 0x3f7   :  { %v645_v46 = vpop.f32.mrb[16].mxu1 }
 0x3f8   :  { %v646_v47 = vadd.f32 %v645_v46, %v1269_v9  ;;  %v964_v48 = vpop.f32.mrb[17].mxu1  ;;  %977 = vmatmul.mubr.msk.f32.vlgmr.msra.gmra.mrb[16].mxu0 %vm259_vm4, %v661_v45 }
 0x3f9   :  { %979 = vmatprep.mubr.msk.f32.mxu0 %vm1050_vm1, %v1049_v4 }
 0x3fa   :  { %v662_v49 = vadd.f32 %v842_v42, %v646_v47 }
 0x3fb   :  { %v650_v50 = vpop.f32.mrb[18].mxu1 }
 0x3fc   :  { %v651_v51 = vadd.f32 %v650_v50, %v1274_v13  ;;  %v967_v52 = vpop.f32.mrb[19].mxu1  ;;  %980 = vmatmul.mubr.msk.f32.gmra.mrb[18].mxu0 %vm259_vm4, %v662_v49 }
 0x3fd   :  { %982 = vmatprep.mubr.msk.f32.mxu0 %vm1050_vm1, %v1049_v4 }
 0x3fe   :  { %v663_v53 = vadd.f32 %v842_v42, %v651_v51 }
 0x400   :  { %983 = vmatmul.mubr.msk.f32.gmra.mrb[20].mxu0 %vm259_vm4, %v663_v53 }
 0x4cb   :  { %v750_v55 = vpop.f32.mrb[16].mxu0 }
 0x4cc   :  { %v751_v56 = vadd.f32 %v843_v54, %v750_v55  ;;  %v978_v57 = vpop.f32.mrb[17].mxu0 }
 0x4ce   :  { %v847_v58 = vclamps-f32 %v751_v56, 1000000.0 }
 0x4cf   :  { %v755_v59 = vpop.f32.mrb[18].mxu0 }
 0x4d0   :  { %v756_v60 = vadd.f32 %v843_v54, %v755_v59  ;;  %785 = vrot.lane.b32.xlu0 %v847_v58, %s1055_s30  ;;  %v981_v61 = vpop.f32.mrb[19].mxu0 }
 0x4d2   :  { %v848_v62 = vclamps-f32 %v756_v60, 1000000.0 }
 0x4d3   :  { %v760_v63 = vpop.f32.mrb[20].mxu0 }
 0x4d4   :  { %v761_v2 = vadd.f32 %v843_v54, %v760_v63  ;;  %787 = vrot.lane.b32.xlu1 %v848_v62, %s1055_s30  ;;  %v984_v4 = vpop.f32.mrb[21].mxu0 }
 0x4d6   :  { %v849_v6 = vclamps-f32 %v761_v2, 1000000.0 }
 0x4d8   :  { %789 = vrot.lane.b32.xlu0 %v849_v6, %s1055_s30 }
 0x542   :  { %v786_v7 = vpop.permute.xlu0 %785 }
 0x543   :  { %v797_v8 = vsel %vm151_vm3, %v794_v36, %v786_v7 }
 0x544   :  { %800 = vst.msk [vmem:[#allocation2] sm:$0xff] %vm259_vm4, %v797_v8 }
 0x546   :  { %v788_v9 = vpop.permute.xlu1 %787 }
 0x547   :  { %v798_v10 = vsel %vm151_vm3, %v795_v39, %v788_v9 }
 0x548   :  { %801 = vst.msk [vmem:[#allocation2 + $0x8] sm:$0xff] %vm259_vm4, %v798_v10 }
 0x54a   :  { %v790_v11 = vpop.permute.xlu0 %789 }
 0x54b   :  { %v799_v12 = vsel %vm151_vm3, %v796_v40, %v790_v11 }
 0x54c   :  { %802 = vst.msk [vmem:[#allocation2 + $0x10] sm:$0xff] %vm259_vm4, %v799_v12 }
 0x54d   :  { %1035 = shalt.err (!%p1032_p4)
}
 0x54e   :  { %s1036_s0 = scalar_lea.hbm %s1357_s13, 384 }
 0x54f   :  { %p1037_p5 = scmp.ne.s32.totalorder %s1357_s13, %s1036_s0  ;;  %p1040_p6 = scmp.lt.u32.totalorder %s1036_s0, %s1357_s13 }
 0x551   :  { %p1042_p7 = pnand %p1040_p6, %p1037_p5 }
 0x553   :  { %1045 = shalt.err (!%p1042_p7)
}
 0x554   :  { %s1057_s7 = smov 128  }
 0x555   :  { %814 = dma.vmem_to_hbm [thread:$0]  %s809_s14, 384, %s1357_s13, [#allocation3], %s1057_s7, %s1057_s7, %s1054_s26  }
 0x556   :  { %1046 = dma.done.wait [#allocation3], 384  }
 0x557   :  { %1047 = vsyncadd [#allocation3], 4294966912 }
 0x558   :  { %818 = vsyncpa [#allocation3], 1 }

</bundles_post_ra>
